<compile_context>
chip_gen: v7x
topology: tpu7x:2x2x1
jax: 0.10.0
libtpu: 0.0.40
codegen_flags: <defaults>
</compile_context>

<pallas_src>
import jax
import jax.numpy as jnp
from jax.experimental import pallas as pl
from jax.experimental.pallas import tpu as pltpu

_LANE_W = 1024                       # preferred slab width (lane-dense stores)
_MAX_TILE_ELEMS = 1024 * 1024        # 4 MiB f32 working set per tile (proven config)
_SUBLANE_MULT = 32                   # row granularity covering f32(8)/bf16(16)/8-bit(32)
_VMEM_LIMIT_BYTES = 48 * 1024 * 1024  # 2 arrays x 2 buffers x <=4 MiB + headroom; < v7x 64 MiB


def _round_up(a, b):
    return ((a + b - 1) // b) * b


# ----------------------------- kernels ---------------------------------------


def _relu_kernel(x_ref, o_ref):
    # Elementwise ReLU in the native dtype (exact); one vmax per vreg, HBM-bound.
    o_ref[...] = jnp.maximum(x_ref[...], 0).astype(o_ref.dtype)


def _fakequant_relu_kernel(qp_ref, x_ref, o_ref):
    # qp_ref lives in SMEM: [scale, zero_point] (scalar math hoisted to the wrapper).
    scale = qp_ref[0]
    zero_point = qp_ref[1]
    # In-register upcast: compute in f32, store back in the input dtype.
    x = x_ref[...].astype(jnp.float32)
    # quantize_tensor (num_bits=8, unsigned): clamp then round (matches the reference order).
    q = jnp.round(jnp.clip(zero_point + x / scale, 0.0, 255.0))
    # dequantize_tensor, then F.relu.
    dq = scale * (q - zero_point)
    o_ref[...] = jnp.maximum(dq, 0.0).astype(o_ref.dtype)


# ----------------------------- wrapper ----------------------------------------


def _tiled_elementwise(kernel, x2d, tile_rows, lane_w, scalar_args=(), flops_per_elem=1):
    rows = x2d.shape[0]
    grid = (pl.cdiv(rows, tile_rows),)  # ragged last row-block handled by Pallas
    blk = pl.BlockSpec((tile_rows, lane_w), lambda i: (i, 0))
    in_specs = (
        [pl.BlockSpec(memory_space=pltpu.MemorySpace.SMEM) for _ in scalar_args] + [blk]
    )
    n = x2d.size
    itemsize = jnp.dtype(x2d.dtype).itemsize
    return pl.pallas_call(
        kernel,
        out_shape=jax.ShapeDtypeStruct(x2d.shape, x2d.dtype),
        grid=grid,
        in_specs=in_specs,
        out_specs=blk,
        compiler_params=pltpu.CompilerParams(
            dimension_semantics=("parallel",),
            vmem_limit_bytes=_VMEM_LIMIT_BYTES,
        ),
        cost_estimate=pl.CostEstimate(
            flops=int(flops_per_elem * n),
            transcendentals=0,
            bytes_accessed=int(2 * n * itemsize),
        ),
    )(*scalar_args, x2d)


def qrelu_forward(x, qi=False):
    """Pallas implementation of QReLU.forward.

    x: any-shape float array (NCHW in the original module); returns same shape/dtype.
    qi=False (module default): plain ReLU.
    qi=True: per-tensor 8-bit fake-quantize followed by ReLU.
    """
    orig_shape = x.shape
    n = x.size
    flat = x.reshape(-1)  # contiguous flatten: free, native dtype throughout

    # Lane width: largest of {1024,512,256,128} that divides n -> zero-copy reshape.
    lane_w = next((w for w in (_LANE_W, 512, 256, 128) if n % w == 0), None)
    if lane_w is None:
        # TODO(synk): n % 128 != 0 still pays one pad + one slice HBM pass; an in-kernel
        # masked-tail store would remove it if such shapes matter in practice.
        lane_w = _LANE_W
        pad = _round_up(n, lane_w) - n
        flat = jnp.pad(flat, (0, pad))  # zeros: relu/fake-quant of 0 is sliced off below
    else:
        pad = 0

    rows = flat.size // lane_w
    x2d = flat.reshape(rows, lane_w)

    # Cap the tile by element count (not bytes) so the in-kernel f32 working set stays
    # at the proven ~4 MiB regardless of input dtype; row count multiple of 32 keeps the
    # block legal for f32/bf16/8-bit sublane packing (full-dim rows are always legal).
    max_tile_rows = max(_SUBLANE_MULT,
                        (_MAX_TILE_ELEMS // lane_w) // _SUBLANE_MULT * _SUBLANE_MULT)
    tile_rows = rows if rows <= max_tile_rows else max_tile_rows

    if not qi:
        out2d = _tiled_elementwise(_relu_kernel, x2d, tile_rows, lane_w, flops_per_elem=1)
    else:
        # Phase 1 (QParam.update + calcScaleZeroPoint): global stats on the native-dtype
        # input (cast fuses into the XLA reduction); scalar math in f32.
        max_val = jnp.maximum(jnp.max(x), 0).astype(jnp.float32)
        min_val = jnp.minimum(jnp.min(x), 0).astype(jnp.float32)
        scale = (max_val - min_val) / 255.0
        # NOTE: all-zero input -> scale == 0 -> NaN zero_point, same as the PyTorch reference.
        zero_point = jnp.round(jnp.clip(255.0 - max_val / scale, 0.0, 255.0))
        qparams = jnp.stack([scale, zero_point]).astype(jnp.float32)  # -> SMEM
        # Phase 2: tiled fused fake-quant + ReLU.
        out2d = _tiled_elementwise(
            _fakequant_relu_kernel, x2d, tile_rows, lane_w,
            scalar_args=(qparams,), flops_per_elem=8,
        )

    out = out2d.reshape(-1)
    if pad:
        out = out[:n]
    return out.reshape(orig_shape)


# ----------------------------- reference & test --------------------------------


def _ref_qrelu(x, qi=False):
    # Pure-JAX reference mirroring the PyTorch module (stats in f32, output in x.dtype).
    if not qi:
        return jnp.maximum(x, 0)
    max_val = jnp.maximum(jnp.max(x), 0).astype(jnp.float32)
    min_val = jnp.minimum(jnp.min(x), 0).astype(jnp.float32)
    scale = (max_val - min_val) / 255.0
    zp = jnp.round(jnp.clip(255.0 - max_val / scale, 0.0, 255.0))
    xf = x.astype(jnp.float32)
    q = jnp.round(jnp.clip(zp + xf / scale, 0.0, 255.0))
    dq = scale * (q - zp)
    return jnp.maximum(dq, 0.0).astype(x.dtype)


if __name__ == "__main__":
    qrelu = jax.jit(qrelu_forward, static_argnames=("qi",))

    key = jax.random.PRNGKey(0)
    x = jax.random.normal(key, (2, 4, 16, 16), dtype=jnp.float32)  # NCHW

    # Default module path: QReLU() -> qi=False -> plain ReLU (exact).
    y = qrelu(x, qi=False)
    jax.block_until_ready(y)
    assert y.shape == x.shape and y.dtype == x.dtype
    assert jnp.array_equal(y, _ref_qrelu(x, qi=False)), "ReLU mismatch"

    # qi=True path: stats reduction + fused fake-quant + ReLU.
    y_q = qrelu(x, qi=True)
    jax.block_until_ready(y_q)
    assert jnp.allclose(y_q, _ref_qrelu(x, qi=True), atol=1e-5), "fake-quant ReLU mismatch"

    # bf16 input: exercises native-dtype I/O with in-kernel f32 upcast (no wrapper casts).
    x_bf = x.astype(jnp.bfloat16)
    y_bf = qrelu(x_bf, qi=False)
    jax.block_until_ready(y_bf)
    assert y_bf.dtype == jnp.bfloat16
    assert jnp.array_equal(y_bf, jnp.maximum(x_bf, 0)), "bf16 ReLU mismatch"

    y_bf_q = qrelu(x_bf, qi=True)
    jax.block_until_ready(y_bf_q)
    assert jnp.allclose(y_bf_q.astype(jnp.float32),
                        _ref_qrelu(x_bf, qi=True).astype(jnp.float32),
                        atol=1e-2), "bf16 fake-quant ReLU mismatch"

    # Element count NOT a multiple of 128 -> exercises the pad/slice fallback path.
    x_odd = jax.random.normal(jax.random.PRNGKey(1), (2, 3, 5, 7), dtype=jnp.float32)
    y_odd = qrelu(x_odd, qi=True)
    jax.block_until_ready(y_odd)
    assert y_odd.shape == x_odd.shape
    assert jnp.allclose(y_odd, _ref_qrelu(x_odd, qi=True), atol=1e-5), "padded-shape mismatch"

    print("KERNEL_OK")
</pallas_src>

<mosaic_0001>
module attributes {stable_mosaic.version = 11 : i64} {
  func.func @_relu_kernel(%arg0: i32, %arg1: memref<2x1024xf32, #tpu.memory_space<vmem>>, %arg2: memref<2x1024xf32, #tpu.memory_space<vmem>>) attributes {dimension_semantics = [#tpu.dimension_semantics<parallel>], iteration_bounds = array<i64: 1>, scalar_prefetch = 0 : i64, scratch_operands = 0 : i64, tpu.core_type = #tpu.core_type<tc>, window_params = [{transform_indices = @transform_0, window_bounds = array<i64: 2, 1024>}, {transform_indices = @transform_1, window_bounds = array<i64: 2, 1024>}]} {
    %c0 = arith.constant 0 : index
    %c0_0 = arith.constant 0 : index
    %0 = vector.load %arg1[%c0, %c0_0] : memref<2x1024xf32, #tpu.memory_space<vmem>>, vector<2x1024xf32>
    %cst = arith.constant 0.000000e+00 : f32
    %1 = vector.broadcast %cst : f32 to vector<2x1024xf32>
    %2 = arith.maximumf %0, %1 : vector<2x1024xf32>
    %c0_1 = arith.constant 0 : index
    %c0_2 = arith.constant 0 : index
    %3 = vector.load %arg2[%c0_1, %c0_2] : memref<2x1024xf32, #tpu.memory_space<vmem>>, vector<2x1024xf32>
    tpu.vector_store %arg2[%c0_1, %c0_2], %2 {strides = array<i32>} : memref<2x1024xf32, #tpu.memory_space<vmem>>, vector<2x1024xf32>,
    return
  }
  func.func @transform_0(%arg0: i32) -> (i32, i32) {
    %c0_i32 = arith.constant 0 : i32
    %c0_i32_0 = arith.constant 0 : i32
    return %arg0, %c0_i32 : i32, i32
  }
  func.func @transform_1(%arg0: i32) -> (i32, i32) {
    %c0_i32 = arith.constant 0 : i32
    %c0_i32_0 = arith.constant 0 : i32
    return %arg0, %c0_i32 : i32, i32
  }
}

</mosaic_0001>

<bundles_post_ra>
// kernel: qrelu_forward.1
= control target key start
LH: loop header
LB: loop body
LE: loop exit
PB: predicated region body
PF: predicated region fallthrough
CT: control target
= control target key end

     0   :  { %s40_s0 = inlined_call_operand.vmem [shape: f32[2,1024], index: 0, kind: input, shape index: {}]   ;;  %s41_s1 = inlined_call_operand.vmem [shape: f32[2,1024], index: 1, kind: output, shape index: {}]  }
   0x1   :  { %v8_v0 = vld [vmem:[%s40_s0] sm:$0xff]  ;;  %v9_v1 = vld [vmem:[%s40_s0 + $0x8] sm:$0xff] }
   0x2   :  { %v10_v2 = vmax.f32 %v8_v0, 0.0  ;;  %v11_v3 = vmax.f32 %v9_v1, 0.0 }
   0x4   :  { %12 = vst [vmem:[%s41_s1] sm:$0xff] %v10_v2  ;;  %13 = vst [vmem:[%s41_s1 + $0x8] sm:$0xff] %v11_v3 }

</bundles_post_ra>
